<compile_context>
chip_gen: v6e
topology: v6e:2x2x1
jax: 0.10.0
libtpu: 0.0.40
codegen_flags: <defaults>
</compile_context>

<pallas_src>
from functools import partial

import jax
import jax.numpy as jnp
import numpy as np
from jax.experimental import pallas as pl
from jax.experimental.pallas import tpu as pltpu


def _round_up(v, m):
    return ((v + m - 1) // m) * m


# ---------------------------------------------------------------------------
# Kernel: for each (token tile i, hidden chunk c):
#   acc[i] += GELU(x[i] @ W1[:, c] + b1[c]) @ W2[c, :]
# finalize:  y[i] = acc[i] + b2
# ---------------------------------------------------------------------------
def mlp_kernel(x_ref, w1_ref, b1_ref, w2_ref, b2_ref, o_ref, acc_ref):
    c = pl.program_id(1)

    @pl.when(c == 0)
    def _():
        acc_ref[...] = jnp.zeros_like(acc_ref)

    # fc1 chunk: bf16 MXU operands, f32 accumulation, f32 bias add
    h = jnp.dot(x_ref[...], w1_ref[...], preferred_element_type=jnp.float32)
    h = h + b1_ref[...]
    # tanh-approx GELU in bf16: transcendental goes to the EUP slot, and the
    # result is already in the fc2 MXU input dtype (no extra cast).
    h = jax.nn.gelu(h.astype(jnp.bfloat16), approximate=True)
    # fc2 chunk, accumulated in f32 scratch
    acc_ref[...] += jnp.dot(h, w2_ref[...], preferred_element_type=jnp.float32)

    @pl.when(c == pl.num_programs(1) - 1)
    def _():
        o_ref[...] = (acc_ref[...] + b2_ref[...]).astype(o_ref.dtype)


# ---------------------------------------------------------------------------
# One-time parameter preparation (hoisted out of the forward path):
# transpose to (in, out), zero-pad every feature dim to a multiple of 128,
# cast weights to bf16 (biases stay f32).
# ---------------------------------------------------------------------------
def prepare_mlp_params(fc1_w, fc1_b, fc2_w, fc2_b):
    hidden, d_in = fc1_w.shape
    d_out = fc2_w.shape[0]
    k_pad = _round_up(d_in, 128)
    h_pad = _round_up(hidden, 128)
    o_pad = _round_up(d_out, 128)

    w1 = jnp.zeros((k_pad, h_pad), jnp.bfloat16)
    w1 = w1.at[:d_in, :hidden].set(fc1_w.T.astype(jnp.bfloat16))
    b1 = jnp.zeros((1, h_pad), jnp.float32).at[:, :hidden].set(
        fc1_b.astype(jnp.float32))
    w2 = jnp.zeros((h_pad, o_pad), jnp.bfloat16)
    w2 = w2.at[:hidden, :d_out].set(fc2_w.T.astype(jnp.bfloat16))
    b2 = jnp.zeros((1, o_pad), jnp.float32).at[:, :d_out].set(
        fc2_b.astype(jnp.float32))
    return w1, b1, w2, b2


# ---------------------------------------------------------------------------
# Forward wrapper: layout plumbing only (flatten tokens, bf16 cast, padding).
# ---------------------------------------------------------------------------
@partial(jax.jit, static_argnames=("d_out", "token_tile", "hidden_chunk"))
def mlp_forward(x, w1, b1, w2, b2, *, d_out, token_tile=256, hidden_chunk=512):
    *lead, d_in = x.shape
    k_pad, h_pad = w1.shape
    o_pad = w2.shape[1]

    m = int(np.prod(lead)) if lead else 1
    # Stream activations in bf16 (halves the per-step x DMA vs f32).
    x2 = x.reshape(m, d_in).astype(jnp.bfloat16)

    # Token tile: multiple of 8 sublanes; ensure >=2 grid steps on the
    # "parallel" axis when m allows so v7x's second TensorCore gets work.
    tm = min(token_tile, _round_up(m, 8))
    if m >= 16 and _round_up(m, tm) // tm < 2:
        tm = _round_up(_round_up(m, 8) // 2, 8)
    m_pad = _round_up(m, tm)

    # Hidden chunk: multiple of 128 that divides h_pad (bounds weight VMEM).
    hc = min(_round_up(hidden_chunk, 128), h_pad)
    while h_pad % hc != 0:
        hc -= 128

    # Zero-pad tokens and K so every tile is (8,128)-aligned and lane-dense.
    x2 = jnp.pad(x2, ((0, m_pad - m), (0, k_pad - d_in)))

    n_tok = m_pad // tm
    n_hid = h_pad // hc

    # Explicit scoped-VMEM budget sized to the chosen tiles (+ headroom),
    # capped below v7x's 64 MiB physical VMEM.
    est_vmem = (
        2 * tm * k_pad * 2          # x tile, bf16, double-buffered
        + 2 * k_pad * hc * 2        # w1 chunk, bf16, double-buffered
        + 2 * 8 * hc * 4            # b1 chunk (sublane-padded)
        + 2 * hc * o_pad * 2        # w2 chunk, bf16, double-buffered
        + 2 * 8 * o_pad * 4         # b2
        + 2 * tm * o_pad * 4        # output tile, f32, double-buffered
        + tm * o_pad * 4)           # f32 accumulator scratch
    vmem_limit = min(max(est_vmem * 3 // 2 + (2 << 20), 16 << 20), 64 << 20)

    out = pl.pallas_call(
        mlp_kernel,
        out_shape=jax.ShapeDtypeStruct((m_pad, o_pad), jnp.float32),
        grid=(n_tok, n_hid),
        in_specs=[
            pl.BlockSpec((tm, k_pad), lambda i, c: (i, 0)),
            pl.BlockSpec((k_pad, hc), lambda i, c: (0, c)),
            pl.BlockSpec((1, hc), lambda i, c: (0, c)),
            pl.BlockSpec((hc, o_pad), lambda i, c: (c, 0)),
            pl.BlockSpec((1, o_pad), lambda i, c: (0, 0)),
        ],
        out_specs=pl.BlockSpec((tm, o_pad), lambda i, c: (i, 0)),
        scratch_shapes=[pltpu.VMEM((tm, o_pad), jnp.float32)],
        compiler_params=pltpu.CompilerParams(
            dimension_semantics=("parallel", "arbitrary"),
            vmem_limit_bytes=int(vmem_limit)),
    )(x2, w1, b1, w2, b2)

    return out[:m, :d_out].reshape(*lead, d_out)


# Pure-JAX f32 reference (PyTorch semantics, exact erf GELU) for validation.
def mlp_reference(x, fc1_w, fc1_b, fc2_w, fc2_b):
    h = x @ fc1_w.T + fc1_b
    h = jax.nn.gelu(h, approximate=False)
    return h @ fc2_w.T + fc2_b


# TODO(synk): training-mode Dropout with p>0 is not implemented (p=0.0 in the
# module => identity); it would use pltpu.prng_seed / pltpu.prng_random_bits.

# ---------------------------------------------------------------------------
if __name__ == "__main__":
    batch, seq, in_features = 2, 8, 32
    hidden_features, out_features = 128, 32

    key = jax.random.PRNGKey(0)
    kx, k1, k2, k3, k4 = jax.random.split(key, 5)
    x = jax.random.normal(kx, (batch, seq, in_features), dtype=jnp.float32)
    fc1_w = 0.05 * jax.random.normal(k1, (hidden_features, in_features),
                                     dtype=jnp.float32)
    fc1_b = 0.05 * jax.random.normal(k2, (hidden_features,), dtype=jnp.float32)
    fc2_w = 0.05 * jax.random.normal(k3, (out_features, hidden_features),
                                     dtype=jnp.float32)
    fc2_b = 0.05 * jax.random.normal(k4, (out_features,), dtype=jnp.float32)

    # Weight prep (transpose / pad / bf16) done ONCE, outside the forward path.
    w1, b1, w2, b2 = prepare_mlp_params(fc1_w, fc1_b, fc2_w, fc2_b)

    y = jax.block_until_ready(
        mlp_forward(x, w1, b1, w2, b2, d_out=out_features))
    y_ref = mlp_reference(x, fc1_w, fc1_b, fc2_w, fc2_b)

    assert y.shape == (batch, seq, out_features)
    assert bool(jnp.all(jnp.isfinite(y)))
    max_err = float(jnp.max(jnp.abs(y - y_ref)))
    assert max_err < 5e-2, f"max abs err {max_err}"
    print("KERNEL_OK")
</pallas_src>

<mosaic_0001>
module attributes {stable_mosaic.version = 11 : i64} {
  func.func @mlp_kernel(%arg0: i32, %arg1: i32, %arg2: memref<8x128xbf16, #tpu.memory_space<vmem>>, %arg3: memref<128x128xbf16, #tpu.memory_space<vmem>>, %arg4: memref<1x128xf32, #tpu.memory_space<vmem>>, %arg5: memref<128x128xbf16, #tpu.memory_space<vmem>>, %arg6: memref<1x128xf32, #tpu.memory_space<vmem>>, %arg7: memref<8x128xf32, #tpu.memory_space<vmem>>, %arg8: memref<8x128xf32, #tpu.memory_space<vmem>>) attributes {dimension_semantics = [#tpu.dimension_semantics<parallel>, #tpu.dimension_semantics<arbitrary>], iteration_bounds = array<i64: 2, 1>, scalar_prefetch = 0 : i64, scratch_operands = 1 : i64, tpu.core_type = #tpu.core_type<tc>, window_params = [{transform_indices = @transform_0, window_bounds = array<i64: 8, 128>}, {transform_indices = @transform_1, window_bounds = array<i64: 128, 128>}, {transform_indices = @transform_2, window_bounds = array<i64: 1, 128>}, {transform_indices = @transform_3, window_bounds = array<i64: 128, 128>}, {pipeline_mode = #tpu.pipeline_mode<synchronous>, transform_indices = @transform_4, window_bounds = array<i64: 1, 128>}, {transform_indices = @transform_5, window_bounds = array<i64: 8, 128>}]} {
    %c0_i32 = arith.constant 0 : i32
    %0 = arith.cmpi eq, %arg1, %c0_i32 : i32
    %1 = arith.extui %0 : i1 to i32
    %c0_i32_0 = arith.constant 0 : i32
    %2 = arith.cmpi ne, %1, %c0_i32_0 : i32
    scf.if %2 {
      %cst_19 = arith.constant 0.000000e+00 : f32
      %31 = vector.broadcast %cst_19 : f32 to vector<8x128xf32>
      %c0_20 = arith.constant 0 : index
      %c0_21 = arith.constant 0 : index
      %32 = vector.load %arg8[%c0_20, %c0_21] : memref<8x128xf32, #tpu.memory_space<vmem>>, vector<8x128xf32>
      tpu.vector_store %arg8[%c0_20, %c0_21], %31 {strides = array<i32>} : memref<8x128xf32, #tpu.memory_space<vmem>>, vector<8x128xf32>,
    } else {
    }
    %c0 = arith.constant 0 : index
    %c0_1 = arith.constant 0 : index
    %3 = vector.load %arg2[%c0, %c0_1] : memref<8x128xbf16, #tpu.memory_space<vmem>>, vector<8x128xbf16>
    %c0_2 = arith.constant 0 : index
    %c0_3 = arith.constant 0 : index
    %4 = vector.load %arg3[%c0_2, %c0_3] : memref<128x128xbf16, #tpu.memory_space<vmem>>, vector<128x128xbf16>
    %cst = arith.constant dense<0.000000e+00> : vector<8x128xf32>
    %5 = tpu.matmul %3, %4, %cst {dimension_numbers = #tpu.dot_dimension_numbers<[1], [0], [0], [1], [0, 0, 1, 1], [], []>} : vector<8x128xbf16>, vector<128x128xbf16>, vector<8x128xf32> -> vector<8x128xf32>
    %c0_4 = arith.constant 0 : index
    %c0_5 = arith.constant 0 : index
    %6 = vector.load %arg4[%c0_4, %c0_5] : memref<1x128xf32, #tpu.memory_space<vmem>>, vector<1x128xf32>
    %7 = vector.broadcast %6 : vector<1x128xf32> to vector<8x128xf32>
    %8 = arith.addf %5, %7 : vector<8x128xf32>
    %9 = arith.truncf %8 : vector<8x128xf32> to vector<8x128xbf16>
    %10 = arith.mulf %9, %9 : vector<8x128xbf16>
    %11 = arith.mulf %9, %10 : vector<8x128xbf16>
    %cst_6 = arith.constant 4.467770e-02 : bf16
    %12 = vector.broadcast %cst_6 : bf16 to vector<8x128xbf16>
    %13 = arith.mulf %12, %11 : vector<8x128xbf16>
    %14 = arith.addf %9, %13 : vector<8x128xbf16>
    %cst_7 = arith.constant 7.968750e-01 : bf16
    %15 = vector.broadcast %cst_7 : bf16 to vector<8x128xbf16>
    %16 = arith.mulf %15, %14 : vector<8x128xbf16>
    %17 = math.tanh %16 : vector<8x128xbf16>
    %cst_8 = arith.constant 1.000000e+00 : bf16
    %18 = vector.broadcast %cst_8 : bf16 to vector<8x128xbf16>
    %19 = arith.addf %18, %17 : vector<8x128xbf16>
    %cst_9 = arith.constant 5.000000e-01 : bf16
    %20 = vector.broadcast %cst_9 : bf16 to vector<8x128xbf16>
    %21 = arith.mulf %20, %19 : vector<8x128xbf16>
    %22 = arith.mulf %9, %21 : vector<8x128xbf16>
    %c0_10 = arith.constant 0 : index
    %c0_11 = arith.constant 0 : index
    %23 = vector.load %arg8[%c0_10, %c0_11] : memref<8x128xf32, #tpu.memory_space<vmem>>, vector<8x128xf32>
    %c0_12 = arith.constant 0 : index
    %c0_13 = arith.constant 0 : index
    %24 = vector.load %arg5[%c0_12, %c0_13] : memref<128x128xbf16, #tpu.memory_space<vmem>>, vector<128x128xbf16>
    %cst_14 = arith.constant dense<0.000000e+00> : vector<8x128xf32>
    %25 = tpu.matmul %22, %24, %cst_14 {dimension_numbers = #tpu.dot_dimension_numbers<[1], [0], [0], [1], [0, 0, 1, 1], [], []>} : vector<8x128xbf16>, vector<128x128xbf16>, vector<8x128xf32> -> vector<8x128xf32>
    %26 = arith.addf %23, %25 : vector<8x128xf32>
    %c0_15 = arith.constant 0 : index
    %c0_16 = arith.constant 0 : index
    %27 = vector.load %arg8[%c0_15, %c0_16] : memref<8x128xf32, #tpu.memory_space<vmem>>, vector<8x128xf32>
    tpu.vector_store %arg8[%c0_15, %c0_16], %26 {strides = array<i32>} : memref<8x128xf32, #tpu.memory_space<vmem>>, vector<8x128xf32>,
    %c0_i32_17 = arith.constant 0 : i32
    %28 = arith.cmpi eq, %arg1, %c0_i32_17 : i32
    %29 = arith.extui %28 : i1 to i32
    %c0_i32_18 = arith.constant 0 : i32
    %30 = arith.cmpi ne, %29, %c0_i32_18 : i32
    scf.if %30 {
      %c0_19 = arith.constant 0 : index
      %c0_20 = arith.constant 0 : index
      %31 = vector.load %arg8[%c0_19, %c0_20] : memref<8x128xf32, #tpu.memory_space<vmem>>, vector<8x128xf32>
      %c0_21 = arith.constant 0 : index
      %c0_22 = arith.constant 0 : index
      %32 = vector.load %arg6[%c0_21, %c0_22] : memref<1x128xf32, #tpu.memory_space<vmem>>, vector<1x128xf32>
      %33 = vector.broadcast %32 : vector<1x128xf32> to vector<8x128xf32>
      %34 = arith.addf %31, %33 : vector<8x128xf32>
      %c0_23 = arith.constant 0 : index
      %c0_24 = arith.constant 0 : index
      %35 = vector.load %arg7[%c0_23, %c0_24] : memref<8x128xf32, #tpu.memory_space<vmem>>, vector<8x128xf32>
      tpu.vector_store %arg7[%c0_23, %c0_24], %34 {strides = array<i32>} : memref<8x128xf32, #tpu.memory_space<vmem>>, vector<8x128xf32>,
    } else {
    }
    return
  }
  func.func @transform_0(%arg0: i32, %arg1: i32) -> (i32, i32) {
    %c0_i32 = arith.constant 0 : i32
    %c0_i32_0 = arith.constant 0 : i32
    return %arg0, %c0_i32 : i32, i32
  }
  func.func @transform_1(%arg0: i32, %arg1: i32) -> (i32, i32) {
    %c0_i32 = arith.constant 0 : i32
    %c0_i32_0 = arith.constant 0 : i32
    return %c0_i32, %arg1 : i32, i32
  }
  func.func @transform_2(%arg0: i32, %arg1: i32) -> (i32, i32) {
    %c0_i32 = arith.constant 0 : i32
    %c0_i32_0 = arith.constant 0 : i32
    return %c0_i32, %arg1 : i32, i32
  }
  func.func @transform_3(%arg0: i32, %arg1: i32) -> (i32, i32) {
    %c0_i32 = arith.constant 0 : i32
    %c0_i32_0 = arith.constant 0 : i32
    return %arg1, %c0_i32 : i32, i32
  }
  func.func @transform_4(%arg0: i32, %arg1: i32) -> (i32, i32) {
    %c0_i32 = arith.constant 0 : i32
    %c0_i32_0 = arith.constant 0 : i32
    %c0_i32_1 = arith.constant 0 : i32
    return %c0_i32, %c0_i32_0 : i32, i32
  }
  func.func @transform_5(%arg0: i32, %arg1: i32) -> (i32, i32) {
    %c0_i32 = arith.constant 0 : i32
    %c0_i32_0 = arith.constant 0 : i32
    return %arg0, %c0_i32 : i32, i32
  }
}

</mosaic_0001>

<bundles_post_ra>
// kernel: mlp_forward.1
= control target key start
LH: loop header
LB: loop body
LE: loop exit
PB: predicated region body
PF: predicated region fallthrough
CT: control target
= control target key end

     0   :  { %10 = vsyncpa [#allocation4], 0  ;;  %s1013_s0 = inlined_call_operand.vmem [shape: bf16[16,128], index: 0, kind: input, shape index: {}]   ;;  %s1014_s1 = inlined_call_operand.hbm [shape: bf16[128,128], index: 1, kind: input, shape index: {}]   ;;  %s1015_s2 = inlined_call_operand.vmem [shape: f32[1,128], index: 2, kind: input, shape index: {}]   ;;  %s1016_s3 = inlined_call_operand.hbm [shape: bf16[128,128], index: 3, kind: input, shape index: {}]   ;;  %s1017_s4 = inlined_call_operand.vmem [shape: f32[1,128], index: 4, kind: input, shape index: {}]   ;;  %s1018_s5 = inlined_call_operand.vmem [shape: f32[16,128], index: 5, kind: output, shape index: {}]  }
   0x1   :  { %11 = vsyncpa [#allocation6], 0  ;;  %s921_s18 = smov 0   ;;  %s923_s19 = smov 0  }
   0x2   :  { %s925_s20 = smov 0  }
   0x3 LB: > { %s644_s21 = sadd.s32 4294967295, %s883_s20   ;;  %s29_s22 = sadd.s32 1, %s879_s19  ;;  %s883_s20 = sphi %s925_s20, %s17_s20   ;;  %s879_s19 = sphi %s923_s19, %s1023_s19   ;;  %s875_s18 = sphi %s921_s18, %s1022_s18  }
   0x4   : > { %p31_p0 = scmp.ge.s32.totalorder %s29_s22, 2  ;;  %p646_p1 = scmp.ge.s32.totalorder %s883_s20, 1 }
   0x5   : > { %p185_p2 = scmp.lt.s32.totalorder %s883_s20, 3  ;;  %p946_p4 = scmp.eq.s32.totalorder %s644_s21, 0 }
   0x6   : > { %s1025_s22 = smov (%p31_p0, %s29_s22), 0  ;;  %s885_s25 = smov [#allocation3]  }
   0x7   : > { %p942_p3 = pnand %p646_p1, %p185_p2  ;;  %s199_s26 = sshll.u32 %s885_s25, 4  ;;  %s200_s26 = int_to_ptr.vmem [resolvable:$true] %s199_s26 }
   0x8   : > { %s886_s28 = smov [#allocation5]   ;;  %s812_s30 = scalar_lea.vmem %s200_s26, 1024 }
   0x9   : > { %p742_p5 = pneg %p942_p3  ;;  %s221_s29 = sshll.u32 %s886_s28, 4  ;;  %s222_s29 = int_to_ptr.vmem [resolvable:$true] %s221_s29 }
   0xa   : > { %p813_p8 = scmp.ne.s32.totalorder %s200_s26, %s812_s30  ;;  %p820_p11 = scmp.lt.s32.totalorder %s200_s26, %s200_s26 }
   0xb   : > { %p954_p6 = pnand %p946_p4, %p742_p5  ;;  %p821_p12 = scmp.lt.s32.totalorder %s812_s30, %s812_s30 }
   0xd   : > { %p803_p7 = pneg %p954_p6  ;;  %p822_p13 = por %p821_p12, %p820_p11 }
   0xf   : > { %p815_p9 = pnand %p813_p8, %p803_p7 }
  0x11   : > { %p816_p10 = pneg %p815_p9 }
  0x13   : > { %p823_p0 = pnand %p822_p13, %p816_p10 }
  0x15   : > { %826 = shalt.err (!%p823_p0)
}
  0x16   : > { %s887_s6 = smov 64   ;;  %s888_s7 = smov 4  }
  0x17   : > { %745 = dma.hbm_to_vmem [thread:$0]  (!%p954_p6), %s1014_s1, 1024, %s200_s26, [#allocation4], %s887_s6, %s887_s6, %s888_s7  }
  0x18   : > { %s838_s10 = scalar_lea.vmem %s222_s29, 1024  ;;  %p846_p8 = scmp.lt.s32.totalorder %s222_s29, %s222_s29 }
  0x19   : > { %p839_p1 = scmp.ne.s32.totalorder %s222_s29, %s838_s10  ;;  %p847_p9 = scmp.lt.s32.totalorder %s838_s10, %s838_s10 }
  0x1b   : > { %p841_p2 = pnand %p839_p1, %p803_p7  ;;  %p848_p11 = por %p847_p9, %p846_p8 }
  0x1d   : > { %p842_p5 = pneg %p841_p2 }
  0x1f   : > { %p849_p10 = pnand %p848_p11, %p842_p5 }
  0x21   : > { %852 = shalt.err (!%p849_p10)
}
  0x22   : > { %748 = dma.hbm_to_vmem [thread:$0]  (!%p954_p6), %s1016_s3, 1024, %s222_s29, [#allocation6], %s887_s6, %s887_s6, %s888_s7  }
  0x23   : > { %247 = sbr.rel (%p942_p3) target bundleno = 504 (0x1f8), region = 40 }
  0x28   : > { %866 = dma.done.wait (%p946_p4), [#allocation4], 1024  }
  0x29   : > { %868 = vsyncadd (%p946_p4), [#allocation4], 4294966272 }
  0x2a   : > { %870 = dma.done.wait (%p946_p4), [#allocation6], 1024  }
  0x2b   : > { %872 = vsyncadd (%p946_p4), [#allocation6], 4294966272  ;;  %v889_v0 = vmov 0.0   ;;  %vm890_vm0 = vmmov 0   ;;  %v783_v1 = vld [vmem:[#allocation3 + $0x38] sm:$0xff]   ;;  %v784_v2 = vld [vmem:[#allocation3 + $0x30] sm:$0xff]  }
  0x2c   : > { %694 = vmatprep.subr.bf16.mxu0 %v889_v0  ;;  %710 = vmatprep.mubr.msk.bf16.mxu0 %vm890_vm0, %v889_v0  ;;  %v785_v3 = vld [vmem:[#allocation3 + $0x28] sm:$0xff]   ;;  %v786_v4 = vld [vmem:[#allocation3 + $0x20] sm:$0xff]   ;;  %v787_v5 = vld [vmem:[#allocation3 + $0x18] sm:$0xff]   ;;  %p280_p3 = scmp.lt.s32.totalorder %s875_s18, 1 }
  0x2d   : > { %714 = vmatprep.subr.bf16.mxu1 %v889_v0  ;;  %730 = vmatprep.mubr.msk.bf16.mxu1 %vm890_vm0, %v889_v0  ;;  %v788_v6 = vld [vmem:[#allocation3 + $0x10] sm:$0xff]   ;;  %v789_v7 = vld [vmem:[#allocation3 + $0x8] sm:$0xff]   ;;  %v790_v8 = vld [vmem:[#allocation3] sm:$0xff]  }
  0x2e   : > { %695 = vmatpush3.bf16.msra.mxu0 %v783_v1  ;;  %s1027_s18 = smov (!%p280_p3, %s875_s18), 1  ;;  %v791_v10 = vld [vmem:[#allocation5 + $0x38] sm:$0xff]   ;;  %v792_v11 = vld [vmem:[#allocation5 + $0x30] sm:$0xff]   ;;  %v793_v12 = vld [vmem:[#allocation5 + $0x28] sm:$0xff]  }
  0x2f   : > { %696 = vmatprep.subr.bf16.mxu0 %v889_v0  ;;  %s654_s13 = sshll.u32 %s1027_s18, 2  ;;  %715 = vmatpush3.bf16.msra.mxu1 %v791_v10  ;;  %v794_v13 = vld [vmem:[#allocation5 + $0x20] sm:$0xff]   ;;  %v795_v14 = vld [vmem:[#allocation5 + $0x18] sm:$0xff]   ;;  %v796_v15 = vld [vmem:[#allocation5 + $0x10] sm:$0xff]   ;;  %s655_s23 = sshll.u32 %s1027_s18, 3 }
  0x30   : > { %s283_s16 = scalar_lea.vmem %s1013_s0, %s654_s13  ;;  %716 = vmatprep.subr.bf16.mxu1 %v889_v0  ;;  %v797_v16 = vld [vmem:[#allocation5 + $0x8] sm:$0xff]   ;;  %v798_v17 = vld [vmem:[#allocation5] sm:$0xff]   ;;  %s291_s28 = scalar_lea.vmem %s1018_s5, %s655_s23 }
  0x31   : > { %v302_v9 = vld [vmem:[%s283_s16] sm:$0xf] }
  0x32   : > { %697 = vmatpush3.bf16.msra.mxu0 %v784_v2  ;;  %v656_v18 = vld [vmem:[%s1015_s2] ss:$0 sm:$0xff] }
  0x33   : > { %698 = vmatprep.subr.bf16.mxu0 %v889_v0  ;;  %717 = vmatpush3.bf16.msra.mxu1 %v792_v11  ;;  %v673_v34 = vld [vmem:[%s1017_s4] ss:$0 sm:$0xff] }
  0x34   : > { %718 = vmatprep.subr.bf16.mxu1 %v889_v0 }
  0x36   : > { %699 = vmatpush3.bf16.msra.mxu0 %v785_v3 }
  0x37   : > { %700 = vmatprep.subr.bf16.mxu0 %v889_v0  ;;  %719 = vmatpush3.bf16.msra.mxu1 %v793_v12 }
  0x38   : > { %720 = vmatprep.subr.bf16.mxu1 %v889_v0 }
  0x3a   : > { %701 = vmatpush3.bf16.msra.mxu0 %v786_v4 }
  0x3b   : > { %702 = vmatprep.subr.bf16.mxu0 %v889_v0  ;;  %721 = vmatpush3.bf16.msra.mxu1 %v794_v13 }
  0x3c   : > { %722 = vmatprep.subr.bf16.mxu1 %v889_v0 }
  0x3e   : > { %703 = vmatpush3.bf16.msra.mxu0 %v787_v5 }
  0x3f   : > { %704 = vmatprep.subr.bf16.mxu0 %v889_v0  ;;  %723 = vmatpush3.bf16.msra.mxu1 %v795_v14 }
  0x40   : > { %724 = vmatprep.subr.bf16.mxu1 %v889_v0 }
  0x42   : > { %705 = vmatpush3.bf16.msra.mxu0 %v788_v6 }
  0x43   : > { %706 = vmatprep.subr.bf16.mxu0 %v889_v0  ;;  %725 = vmatpush3.bf16.msra.mxu1 %v796_v15 }
  0x44   : > { %726 = vmatprep.subr.bf16.mxu1 %v889_v0 }
  0x46   : > { %707 = vmatpush3.bf16.msra.mxu0 %v789_v7 }
  0x47   : > { %708 = vmatprep.subr.bf16.mxu0 %v889_v0  ;;  %727 = vmatpush3.bf16.msra.mxu1 %v797_v16 }
  0x48   : > { %728 = vmatprep.subr.bf16.mxu1 %v889_v0 }
  0x4a   : > { %709 = vmatpush3.bf16.msra.mxu0 %v790_v8 }
  0x4b   : > { %729 = vmatpush3.bf16.msra.mxu1 %v798_v17 }
  0x4d   : > { %711 = vmatmul.mubr.bf16.vlgmr.msra.gmra.mxu0 %v302_v9 }
 0x10d   : > { %v408_v19 = vpop.f32.mrf.mxu0 }
 0x10e   : > { %v409_v20 = vadd.f32 %v656_v18, %v408_v19 }
 0x10f   : > { %v712_v21 = vpop.f32.mrf.mxu0 }
 0x110   : > { %v414_v22 = vpack.c.bf16 %v409_v20, %v409_v20 }
 0x111   : > { %v411_v23 = vpop.f32.mrf.mxu0 }
 0x112   : > { %v415_v24 = vmul.bf16 %v414_v22, %v414_v22 }
 0x113   : > { %v713_v25 = vpop.f32.mrf.mxu0 }
 0x114   : > { %v416_v26 = vmul.bf16 %v415_v24, %v414_v22 }
 0x116   : > { %v417_v27 = vmul.bf16 1027030327, %v416_v26 }
 0x118   : > { %v418_v28 = vadd.bf16 %v417_v27, %v414_v22 }
 0x11a   : > { %v419_v29 = vmul.bf16 1061961548, %v418_v28 }
 0x11c   : > { %799 = vtanh.bf16 %v419_v29 }
 0x12a   : > { %v800_v30 = vpop.eup %799 }
 0x12b   : > { %v421_v31 = vadd.bf16 1065369472, %v800_v30 }
 0x12d   : > { %v422_v32 = vmul.bf16 1056980736, %v421_v31 }
 0x12f   : > { %v423_v33 = vmul.bf16 %v422_v32, %v414_v22 }
 0x131   : > { %731 = vmatmul.mubr.bf16.vlgmr.msra.gmra.mxu1 %v423_v33 }
 0x1f1   : > { %v523_v35 = vpop.f32.mrf.mxu1 }
 0x1f2   : > { %v542_v36 = vadd.f32 %v673_v34, %v523_v35 }
 0x1f3   : > { %v732_v37 = vpop.f32.mrf.mxu1 }
 0x1f4   : > { %543 = vst [vmem:[%s291_s28] sm:$0xff] %v542_v36 }
 0x1f5   : > { %v526_v38 = vpop.f32.mrf.mxu1 }
 0x1f7   : > { %v733_v39 = vpop.f32.mrf.mxu1 }
 0x1f8 PF: > { %s17_s20 = sadd.s32 1, %s883_s20   ;;  %s1022_s18 = smov %s879_s19 }
 0x1f9   : > { %p14_p4 = scmp.ge.s32.totalorder %s17_s20, 4   ;;  %s1023_s19 = smov %s1025_s22 }
 0x1fb   :  { %16 = sbr.rel (!%p14_p4) target bundleno = 3 (0x3), region = 92 }
 0x200   :  { %563 = vsyncpa [#allocation4], 1 }
 0x201   :  { %565 = vsyncpa [#allocation4 + $0x1], 1 }
 0x202   :  { %566 = vsyncpa [#allocation6], 1 }

</bundles_post_ra>
